<compile_context>
chip_gen: v6e
topology: v6e:2x2x1
jax: 0.10.0
libtpu: 0.0.40
codegen_flags: <defaults>
</compile_context>

<pallas_src>
import functools

import jax
import jax.numpy as jnp
from jax.experimental import pallas as pl
from jax.experimental.pallas import tpu as pltpu


def _round_up(x, m):
    return (x + m - 1) // m * m


def _dynamics_params_kernel(x_ref, w1_ref, w2_ref, wh_ref, b_ref, out_ref, *, obs_dim):
    """Fused encoder(MLP) + Normal-params head for one batch tile.

    x_ref   : [tb, in_dim]   bf16   (obs | actions)
    w1_ref  : [in_dim, H]    bf16
    w2_ref  : [H, H]         bf16
    wh_ref  : [H, out_w]     bf16   lanes = [Wloc | Wscale | 0-pad]
    b_ref   : [3, bw]        f32    row0 = b1, row1 = b2, row2 = [bloc | bscale | 0]
    out_ref : [tb, out_w]    bf16   lanes [0,obs_dim) = loc, [obs_dim,2*obs_dim) = scale
    """
    H = w2_ref.shape[0]
    out_w = wh_ref.shape[1]

    b1 = b_ref[0:1, :H]          # [1, H]      f32
    b2 = b_ref[1:2, :H]          # [1, H]      f32
    bh = b_ref[2:3, :out_w]      # [1, out_w]  f32

    # encoder: x @ W1 -> ReLU -> @ W2 -> ReLU   (bf16 MXU operands, f32 accumulation)
    h1 = jnp.dot(x_ref[...], w1_ref[...], preferred_element_type=jnp.float32) + b1
    h1 = jnp.maximum(h1, 0.0).astype(w2_ref.dtype)

    h2 = jnp.dot(h1, w2_ref[...], preferred_element_type=jnp.float32) + b2
    h2 = jnp.maximum(h2, 0.0).astype(wh_ref.dtype)

    # fused head: lanes [0, obs_dim) = loc, [obs_dim, 2*obs_dim) = pre-softplus scale,
    # remaining lanes are zero padding (sliced away by the wrapper).
    head = jnp.dot(h2, wh_ref[...], preferred_element_type=jnp.float32) + bh

    # numerically-stable softplus over the whole slab (EUP exp/log1p), then a lane
    # mask selects loc vs softplus(scale) with zero cross-lane data movement.
    sp = jnp.maximum(head, 0.0) + jnp.log1p(jnp.exp(-jnp.abs(head)))
    lane = jax.lax.broadcasted_iota(jnp.int32, head.shape, dimension=1)
    out = jnp.where(lane >= obs_dim, sp, head)

    out_ref[...] = out.astype(out_ref.dtype)


def prepare_weights(weights, obs_dim):
    """One-time packing of the parameters into MXU-friendly slabs (reused per call)."""
    (w1, b1, w2, b2, wloc, bloc, wscale, bscale) = weights
    in_dim, H = w1.shape
    two_out = 2 * obs_dim
    out_w = _round_up(two_out, 128)         # lane-dense output slab (>= 128 lanes)
    bw = max(H, out_w)

    w1b = w1.astype(jnp.bfloat16)                                    # [in_dim, H]
    w2b = w2.astype(jnp.bfloat16)                                    # [H, H]
    wh = jnp.zeros((H, out_w), jnp.bfloat16)
    wh = wh.at[:, :obs_dim].set(wloc.astype(jnp.bfloat16))
    wh = wh.at[:, obs_dim:two_out].set(wscale.astype(jnp.bfloat16))  # [H, out_w]

    bias_slab = jnp.zeros((3, bw), jnp.float32)
    bias_slab = bias_slab.at[0, :H].set(b1.reshape(-1))
    bias_slab = bias_slab.at[1, :H].set(b2.reshape(-1))
    bias_slab = bias_slab.at[2, :obs_dim].set(bloc.reshape(-1))
    bias_slab = bias_slab.at[2, obs_dim:two_out].set(bscale.reshape(-1))

    return (w1b, w2b, wh, bias_slab)


@functools.partial(jax.jit, static_argnames=("block_b", "out_dtype"))
def dynamics_params_forward(obs, actions, prepared, *, block_b=1024,
                            out_dtype=jnp.bfloat16):
    """obs [B, obs_dim], actions [B, act_dim] -> (loc [B, obs_dim], scale [B, obs_dim])."""
    w1b, w2b, wh, bias_slab = prepared
    B, obs_dim = obs.shape
    act_dim = actions.shape[-1]
    in_dim, H = w1b.shape
    out_w = wh.shape[1]
    bw = bias_slab.shape[1]
    two_out = 2 * obs_dim
    assert in_dim == obs_dim + act_dim

    # ---- batch tiling: multiples of 16 (bf16 sublane packing) ----
    Bp16 = _round_up(B, 16)
    tb = min(_round_up(block_b, 16), Bp16)
    # v7x: make sure there are >= 2 grid tiles so the "parallel" batch axis can be
    # sharded across both TensorCores (no-op on single-TC v5e/v6e).
    if tb == Bp16 and tb >= 32:
        tb = _round_up(tb // 2, 16)

    # Conservative VMEM budget (vs v7x's 64 MiB/TC): the default pipeline
    # double-buffers everything, including the resident weights.
    def _vmem_need(t):
        return 2 * (2 * (in_dim * H + H * H + H * out_w)   # bf16 weights
                    + 4 * 3 * bw                           # f32 bias slab
                    + 2 * t * (in_dim + out_w))            # bf16 act in/out tiles
    VMEM_BUDGET = 48 * 1024 * 1024
    while tb > 16 and _vmem_need(tb) > VMEM_BUDGET:
        tb = _round_up(tb // 2, 16)

    Bp = _round_up(B, tb)

    # Single fused bf16 (obs|actions) slab; the ragged-batch pad is fused by XLA into
    # the same cast/concat producer (no separate f32 pad round trip through HBM).
    x = jnp.concatenate([obs, actions], axis=-1).astype(jnp.bfloat16)
    if Bp != B:
        x = jnp.pad(x, ((0, Bp - B), (0, 0)))

    const = lambda i: (0, 0)   # weights/biases resident in VMEM across the batch grid
    out_bytes = jnp.dtype(out_dtype).itemsize

    cost = pl.CostEstimate(
        flops=2 * Bp * (in_dim * H + H * H + H * out_w),
        transcendentals=2 * Bp * out_w,                     # exp + log1p of softplus
        bytes_accessed=(Bp * in_dim * 2                     # activations in (bf16)
                        + 2 * (in_dim * H + H * H + H * out_w) + 4 * 3 * bw  # weights
                        + Bp * out_w * out_bytes),          # output slab
    )

    out = pl.pallas_call(
        functools.partial(_dynamics_params_kernel, obs_dim=obs_dim),
        out_shape=jax.ShapeDtypeStruct((Bp, out_w), out_dtype),
        grid=(Bp // tb,),
        in_specs=[
            pl.BlockSpec((tb, in_dim), lambda i: (i, 0)),
            pl.BlockSpec((in_dim, H), const),
            pl.BlockSpec((H, H), const),
            pl.BlockSpec((H, out_w), const),
            pl.BlockSpec((3, bw), const),
        ],
        out_specs=pl.BlockSpec((tb, out_w), lambda i: (i, 0)),
        compiler_params=pltpu.CompilerParams(
            dimension_semantics=("parallel",),   # v7x: shard batch tiles over 2 TCs
            vmem_limit_bytes=int(min(max(2 * _vmem_need(tb), 32 * 1024 * 1024),
                                     60 * 1024 * 1024)),
        ),
        cost_estimate=cost,
    )(x, w1b, w2b, wh, bias_slab)

    loc = out[:B, :obs_dim]
    scale = out[:B, obs_dim:two_out]
    return loc, scale


def init_weights(key, in_dim, hidden, out_dim):
    """Deterministic PyTorch-style uniform(-1/sqrt(fan_in)) init. Biases kept 2D [1, F]."""
    def linear(k, fan_in, fan_out):
        kw, kb = jax.random.split(k)
        bound = 1.0 / jnp.sqrt(fan_in)
        w = jax.random.uniform(kw, (fan_in, fan_out), jnp.float32, -bound, bound)
        b = jax.random.uniform(kb, (1, fan_out), jnp.float32, -bound, bound)
        return w, b

    k1, k2, k3, k4 = jax.random.split(key, 4)
    w1, b1 = linear(k1, in_dim, hidden)
    w2, b2 = linear(k2, hidden, hidden)
    wloc, bloc = linear(k3, hidden, out_dim)
    wscale, bscale = linear(k4, hidden, out_dim)
    return (w1, b1, w2, b2, wloc, bloc, wscale, bscale)


def reference_forward(obs, actions, weights):
    """Pure-JAX f32 reference of the same forward pass."""
    (w1, b1, w2, b2, wloc, bloc, wscale, bscale) = weights
    x = jnp.concatenate([obs, actions], axis=-1).astype(jnp.float32)
    h1 = jax.nn.relu(x @ w1 + b1)
    h2 = jax.nn.relu(h1 @ w2 + b2)
    loc = h2 @ wloc + bloc
    scale = jax.nn.softplus(h2 @ wscale + bscale)
    return loc, scale


if __name__ == "__main__":
    # Small shapes; B deliberately not a multiple of 16 to exercise the in-producer
    # padding, and small enough that the auto-split gives a 2-step batch grid.
    B, obs_dim, act_dim, hidden = 20, 16, 8, 32
    in_dim = obs_dim + act_dim

    key = jax.random.PRNGKey(0)
    k_obs, k_act, k_w = jax.random.split(key, 3)
    obs = jax.random.normal(k_obs, (B, obs_dim), jnp.float32)
    actions = jax.random.normal(k_act, (B, act_dim), jnp.float32)
    weights = init_weights(k_w, in_dim, hidden, obs_dim)

    prepared = prepare_weights(weights, obs_dim)     # one-time; reused across calls
    loc, scale = dynamics_params_forward(obs, actions, prepared)
    jax.block_until_ready((loc, scale))

    # Verify against the pure-JAX f32 reference (bf16 matmul operands and bf16
    # output writeback -> relaxed tolerance).
    loc_ref, scale_ref = reference_forward(obs, actions, weights)
    assert loc.shape == (B, obs_dim) and scale.shape == (B, obs_dim)
    assert jnp.allclose(loc.astype(jnp.float32), loc_ref, atol=5e-2, rtol=5e-2)
    assert jnp.allclose(scale.astype(jnp.float32), scale_ref, atol=5e-2, rtol=5e-2)
    assert bool(jnp.all(scale > 0.0))

    print("KERNEL_OK")
</pallas_src>

<mosaic_0001>
module attributes {stable_mosaic.version = 11 : i64} {
  func.func @_dynamics_params_kernel(%arg0: i32, %arg1: memref<16x24xbf16, #tpu.memory_space<vmem>>, %arg2: memref<24x32xbf16, #tpu.memory_space<vmem>>, %arg3: memref<32x32xbf16, #tpu.memory_space<vmem>>, %arg4: memref<32x128xbf16, #tpu.memory_space<vmem>>, %arg5: memref<3x128xf32, #tpu.memory_space<vmem>>, %arg6: memref<16x128xbf16, #tpu.memory_space<vmem>>) attributes {dimension_semantics = [#tpu.dimension_semantics<parallel>], iteration_bounds = array<i64: 2>, scalar_prefetch = 0 : i64, scratch_operands = 0 : i64, tpu.core_type = #tpu.core_type<tc>, window_params = [{transform_indices = @transform_0, window_bounds = array<i64: 16, 24>}, {pipeline_mode = #tpu.pipeline_mode<synchronous>, transform_indices = @transform_1, window_bounds = array<i64: 24, 32>}, {pipeline_mode = #tpu.pipeline_mode<synchronous>, transform_indices = @transform_2, window_bounds = array<i64: 32, 32>}, {pipeline_mode = #tpu.pipeline_mode<synchronous>, transform_indices = @transform_3, window_bounds = array<i64: 32, 128>}, {pipeline_mode = #tpu.pipeline_mode<synchronous>, transform_indices = @transform_4, window_bounds = array<i64: 3, 128>}, {transform_indices = @transform_5, window_bounds = array<i64: 16, 128>}]} {
    %c0 = arith.constant 0 : index
    %c0_0 = arith.constant 0 : index
    %0 = vector.load %arg5[%c0, %c0_0] : memref<3x128xf32, #tpu.memory_space<vmem>>, vector<1x32xf32>
    %c1 = arith.constant 1 : index
    %c0_1 = arith.constant 0 : index
    %1 = vector.load %arg5[%c1, %c0_1] : memref<3x128xf32, #tpu.memory_space<vmem>>, vector<1x32xf32>
    %c2 = arith.constant 2 : index
    %c0_2 = arith.constant 0 : index
    %2 = vector.load %arg5[%c2, %c0_2] : memref<3x128xf32, #tpu.memory_space<vmem>>, vector<1x128xf32>
    %c0_3 = arith.constant 0 : index
    %c0_4 = arith.constant 0 : index
    %3 = vector.load %arg1[%c0_3, %c0_4] : memref<16x24xbf16, #tpu.memory_space<vmem>>, vector<16x24xbf16>
    %c0_5 = arith.constant 0 : index
    %c0_6 = arith.constant 0 : index
    %4 = vector.load %arg2[%c0_5, %c0_6] : memref<24x32xbf16, #tpu.memory_space<vmem>>, vector<24x32xbf16>
    %cst = arith.constant dense<0.000000e+00> : vector<16x32xf32>
    %5 = tpu.matmul %3, %4, %cst {dimension_numbers = #tpu.dot_dimension_numbers<[1], [0], [0], [1], [0, 0, 1, 1], [], []>} : vector<16x24xbf16>, vector<24x32xbf16>, vector<16x32xf32> -> vector<16x32xf32>
    %6 = vector.broadcast %0 : vector<1x32xf32> to vector<16x32xf32>
    %7 = arith.addf %5, %6 : vector<16x32xf32>
    %cst_7 = arith.constant 0.000000e+00 : f32
    %8 = vector.broadcast %cst_7 : f32 to vector<16x32xf32>
    %9 = arith.maximumf %7, %8 : vector<16x32xf32>
    %10 = arith.truncf %9 : vector<16x32xf32> to vector<16x32xbf16>
    %c0_8 = arith.constant 0 : index
    %c0_9 = arith.constant 0 : index
    %11 = vector.load %arg3[%c0_8, %c0_9] : memref<32x32xbf16, #tpu.memory_space<vmem>>, vector<32x32xbf16>
    %cst_10 = arith.constant dense<0.000000e+00> : vector<16x32xf32>
    %12 = tpu.matmul %10, %11, %cst_10 {dimension_numbers = #tpu.dot_dimension_numbers<[1], [0], [0], [1], [0, 0, 1, 1], [], []>} : vector<16x32xbf16>, vector<32x32xbf16>, vector<16x32xf32> -> vector<16x32xf32>
    %13 = vector.broadcast %1 : vector<1x32xf32> to vector<16x32xf32>
    %14 = arith.addf %12, %13 : vector<16x32xf32>
    %cst_11 = arith.constant 0.000000e+00 : f32
    %15 = vector.broadcast %cst_11 : f32 to vector<16x32xf32>
    %16 = arith.maximumf %14, %15 : vector<16x32xf32>
    %17 = arith.truncf %16 : vector<16x32xf32> to vector<16x32xbf16>
    %c0_12 = arith.constant 0 : index
    %c0_13 = arith.constant 0 : index
    %18 = vector.load %arg4[%c0_12, %c0_13] : memref<32x128xbf16, #tpu.memory_space<vmem>>, vector<32x128xbf16>
    %cst_14 = arith.constant dense<0.000000e+00> : vector<16x128xf32>
    %19 = tpu.matmul %17, %18, %cst_14 {dimension_numbers = #tpu.dot_dimension_numbers<[1], [0], [0], [1], [0, 0, 1, 1], [], []>} : vector<16x32xbf16>, vector<32x128xbf16>, vector<16x128xf32> -> vector<16x128xf32>
    %20 = vector.broadcast %2 : vector<1x128xf32> to vector<16x128xf32>
    %21 = arith.addf %19, %20 : vector<16x128xf32>
    %cst_15 = arith.constant 0.000000e+00 : f32
    %22 = vector.broadcast %cst_15 : f32 to vector<16x128xf32>
    %23 = arith.maximumf %21, %22 : vector<16x128xf32>
    %24 = math.absf %21 : vector<16x128xf32>
    %cst_16 = arith.constant 0.000000e+00 : f32
    %25 = vector.broadcast %cst_16 : f32 to vector<16x128xf32>
    %26 = arith.subf %25, %24 : vector<16x128xf32>
    %27 = math.exp %26 : vector<16x128xf32>
    %28 = math.log1p %27 : vector<16x128xf32>
    %29 = arith.addf %23, %28 : vector<16x128xf32>
    %30 = tpu.iota {dimensions = array<i32: 1>} : vector<16x128xi32>
    %c16_i32 = arith.constant 16 : i32
    %31 = vector.broadcast %c16_i32 : i32 to vector<16x128xi32>
    %32 = arith.cmpi sge, %30, %31 : vector<16x128xi32>
    %33 = arith.select %32, %29, %21 : vector<16x128xi1>, vector<16x128xf32>
    %34 = arith.truncf %33 : vector<16x128xf32> to vector<16x128xbf16>
    %c0_17 = arith.constant 0 : index
    %c0_18 = arith.constant 0 : index
    %35 = vector.load %arg6[%c0_17, %c0_18] : memref<16x128xbf16, #tpu.memory_space<vmem>>, vector<16x128xbf16>
    tpu.vector_store %arg6[%c0_17, %c0_18], %34 {strides = array<i32>} : memref<16x128xbf16, #tpu.memory_space<vmem>>, vector<16x128xbf16>,
    return
  }
  func.func @transform_0(%arg0: i32) -> (i32, i32) {
    %c0_i32 = arith.constant 0 : i32
    %c0_i32_0 = arith.constant 0 : i32
    return %arg0, %c0_i32 : i32, i32
  }
  func.func @transform_1(%arg0: i32) -> (i32, i32) {
    %c0_i32 = arith.constant 0 : i32
    %c0_i32_0 = arith.constant 0 : i32
    %c0_i32_1 = arith.constant 0 : i32
    return %c0_i32, %c0_i32_0 : i32, i32
  }
  func.func @transform_2(%arg0: i32) -> (i32, i32) {
    %c0_i32 = arith.constant 0 : i32
    %c0_i32_0 = arith.constant 0 : i32
    %c0_i32_1 = arith.constant 0 : i32
    return %c0_i32, %c0_i32_0 : i32, i32
  }
  func.func @transform_3(%arg0: i32) -> (i32, i32) {
    %c0_i32 = arith.constant 0 : i32
    %c0_i32_0 = arith.constant 0 : i32
    %c0_i32_1 = arith.constant 0 : i32
    return %c0_i32, %c0_i32_0 : i32, i32
  }
  func.func @transform_4(%arg0: i32) -> (i32, i32) {
    %c0_i32 = arith.constant 0 : i32
    %c0_i32_0 = arith.constant 0 : i32
    %c0_i32_1 = arith.constant 0 : i32
    return %c0_i32, %c0_i32_0 : i32, i32
  }
  func.func @transform_5(%arg0: i32) -> (i32, i32) {
    %c0_i32 = arith.constant 0 : i32
    %c0_i32_0 = arith.constant 0 : i32
    return %arg0, %c0_i32 : i32, i32
  }
}

</mosaic_0001>

<bundles_post_ra>
// kernel: dynamics_params_forward.1
= control target key start
LH: loop header
LB: loop body
LE: loop exit
PB: predicated region body
PF: predicated region fallthrough
CT: control target
= control target key end

     0   :  { %s671_s18 = smov 0   ;;  %s727_s0 = inlined_call_operand.vmem [shape: bf16[32,24], index: 0, kind: input, shape index: {}]   ;;  %s728_s1 = inlined_call_operand.vmem [shape: bf16[24,32], index: 1, kind: input, shape index: {}]   ;;  %s729_s2 = inlined_call_operand.vmem [shape: bf16[32,32], index: 2, kind: input, shape index: {}]   ;;  %s730_s3 = inlined_call_operand.vmem [shape: bf16[32,128], index: 3, kind: input, shape index: {}]   ;;  %s731_s4 = inlined_call_operand.vmem [shape: f32[3,128], index: 4, kind: input, shape index: {}]   ;;  %s732_s5 = inlined_call_operand.vmem [shape: bf16[32,128], index: 5, kind: output, shape index: {}]  }
   0x1 LB: > { %s540_s19 = sadd.s32 4294967295, %s637_s18   ;;  %p544_p0 = scmp.ge.s32.totalorder %s637_s18, 1  ;;  %s637_s18 = sphi %s671_s18, %s15_s18  }
   0x2   : > { %p188_p1 = scmp.lt.s32.totalorder %s637_s18, 3 }
   0x4   : > { %p189_p2 = pnand %p544_p0, %p188_p1 }
   0x5   : > { %s545_s22 = sshll.u32 (!%p189_p2), %s540_s19, 1 }
   0x6   : > { %192 = sbr.rel (%p189_p2) target bundleno = 671 (0x29f), region = 40  ;;  %p217_p3 = scmp.lt.s32.totalorder (!%p189_p2), %s545_s22, 3 }
   0xb   : > { %v616_v0 = vld [vmem:[%s728_s1 + $0x8] ss:$0 sps:$4 sm:$0xff]   ;;  %vm259_vm0 = vcmask 1043456   ;;  %v639_v1 = vmov 0.0   ;;  %vm640_vm1 = vmmov 0   ;;  %v617_v3 = vld [vmem:[%s728_s1] sm:$0xff]   ;;  %v469_v50 = vlaneseq }
   0xc   : > { %582 = vmatprep.subr.bf16.mxu0 %v639_v1  ;;  %590 = vmatprep.subr.bf16.mxu1 %v639_v1  ;;  %v261_v2 = vsel %vm259_vm0, %v616_v0, 0  ;;  %s734_s22 = smov (!%p217_p3, %s545_s22), 3  ;;  %vm255_vm2 = vcmask 195584   ;;  %v619_v5 = vld [vmem:[%s729_s2 + $0x8] sm:$0xff]   ;;  %v620_v6 = vld [vmem:[%s729_s2] sm:$0xff]   ;;  %vm327_vm3 = vcmask 261120  }
   0xd   : > { %586 = vmatprep.mubr.msk.bf16.mxu0 %vm640_vm1, %v639_v1  ;;  %594 = vmatprep.mubr.msk.bf16.mxu1 %vm640_vm1, %v639_v1  ;;  %s546_s25 = sshll.u32 %s734_s22, 2  ;;  %v549_v7 = vld [vmem:[%s731_s4] ss:$0 sm:$0xff]  ;;  %v621_v17 = vld [vmem:[%s730_s3 + $0x8] sm:$0xff]   ;;  %v554_v19 = vld [vmem:[%s731_s4 + $0x1] ss:$0 sm:$0xff] }
   0xe   : > { %583 = vmatpush3.bf16.msra.mxu0 %v261_v2  ;;  %s220_s28 = scalar_lea.vmem %s727_s0, %s546_s25  ;;  %591 = vmatpush3.bf16.msra.mxu1 %v619_v5  ;;  %v622_v18 = vld [vmem:[%s730_s3] sm:$0xff]   ;;  %v470_v57 = vand.u32 127, %v469_v50  ;;  %s226_s21 = scalar_lea.vmem %s732_s5, %s546_s25 }
   0xf   : > { %584 = vmatprep.subr.bf16.mxu0 %v639_v1  ;;  %v618_v4 = vld [vmem:[%s220_s28] sm:$0xff]   ;;  %592 = vmatprep.subr.bf16.mxu1 %v639_v1 }
  0x10   : > { %v558_v29 = vld [vmem:[%s731_s4 + $0x2] ss:$0 sm:$0xff]  ;;  %vm471_vm6 = vcmp.ge.s32.totalorder %v470_v57, 16 }
  0x12   : > { %585 = vmatpush3.bf16.msra.mxu0 %v617_v3  ;;  %593 = vmatpush3.bf16.msra.mxu1 %v620_v6 }
  0x13   : > { %598 = vmatprep.subr.bf16.mxu0 %v639_v1 }
  0x15   : > { %587 = vmatmul.mubr.msk.bf16.vlgmr.msra.gmra.mxu0 %vm255_vm2, %v618_v4 }
  0x16   : > { %602 = vmatprep.mubr.msk.bf16.mxu0 %vm640_vm1, %v639_v1  ;;  %599 = vmatpush3.bf16.msra.mxu0 %v621_v17 }
  0x17   : > { %600 = vmatprep.subr.bf16.mxu0 %v639_v1 }
  0x1a   : > { %601 = vmatpush3.bf16.msra.mxu0 %v622_v18 }
  0xd5   : > { %v297_v8 = vpop.f32.mrf.mxu0 }
  0xd6   : > { %v298_v10 = vadd.f32 %v549_v7, %v297_v8 }
  0xd7   : > { %v588_v9 = vpop.f32.mrf.mxu0 }
  0xd8   : > { %v304_v14 = vmax.f32 %v298_v10, 0.0 }
  0xd9   : > { %v300_v11 = vpop.f32.mrf.mxu0 }
  0xda   : > { %v301_v12 = vadd.f32 %v549_v7, %v300_v11 }
  0xdb   : > { %v589_v13 = vpop.f32.mrf.mxu0 }
  0xdc   : > { %v305_v15 = vmax.f32 %v301_v12, 0.0 }
  0xde   : > { %v306_v16 = vpack.c.bf16 %v305_v15, %v304_v14 }
  0xe0   : > { %595 = vmatmul.mubr.msk.bf16.vlgmr.msra.gmra.mxu1 %vm327_vm3, %v306_v16 }
 0x1a0   : > { %v365_v20 = vpop.f32.mrf.mxu1 }
 0x1a1   : > { %v366_v22 = vadd.f32 %v554_v19, %v365_v20 }
 0x1a2   : > { %v596_v21 = vpop.f32.mrf.mxu1 }
 0x1a3   : > { %v372_v26 = vmax.f32 %v366_v22, 0.0 }
 0x1a4   : > { %v368_v23 = vpop.f32.mrf.mxu1 }
 0x1a5   : > { %v369_v24 = vadd.f32 %v554_v19, %v368_v23 }
 0x1a6   : > { %v597_v25 = vpop.f32.mrf.mxu1 }
 0x1a7   : > { %v373_v27 = vmax.f32 %v369_v24, 0.0 }
 0x1a9   : > { %v374_v28 = vpack.c.bf16 %v373_v27, %v372_v26 }
 0x1ab   : > { %603 = vmatmul.mubr.msk.bf16.vlgmr.msra.gmra.mxu0 %vm327_vm3, %v374_v28 }
 0x26b   : > { %v432_v30 = vpop.f32.mrf.mxu0 }
 0x26c   : > { %v433_v31 = vadd.f32 %v558_v29, %v432_v30 }
 0x26d   : > { %v604_v32 = vpop.f32.mrf.mxu0 }
 0x26e   : > { %v441_v33 = vand.u32 2147483647, %v433_v31  ;;  %v439_v59 = vmax.f32 %v433_v31, 0.0 }
 0x26f   : > { %v435_v34 = vpop.f32.mrf.mxu0 }
 0x270   : > { %v443_v35 = vsub.f32 0.0, %v441_v33  ;;  %v436_v36 = vadd.f32 %v558_v29, %v435_v34 }
 0x271   : > { %v605_v37 = vpop.f32.mrf.mxu0 }
 0x272   : > { %v445_v38 = vmul.f32 1.442695, %v443_v35  ;;  %v442_v39 = vand.u32 2147483647, %v436_v36  ;;  %v440_v63 = vmax.f32 %v436_v36, 0.0 }
 0x274   : > { %623 = vpow2.f32 %v445_v38  ;;  %v444_v40 = vsub.f32 0.0, %v442_v39 }
 0x276   : > { %v447_v41 = vmul.f32 1.442695, %v444_v40 }
 0x278   : > { %625 = vpow2.f32 %v447_v41 }
 0x281   : > { %v624_v42 = vpop.eup %623 }
 0x282   : > { %v449_v43 = vadd.f32 1.0, %v624_v42  ;;  %v452_v46 = vmul.f32 -0.5, %v624_v42  ;;  %v455_v49 = vand.u32 2147483647, %v624_v42 }
 0x284   : > { %627 = vlog2.f32 %v449_v43  ;;  %v453_v47 = vadd.f32 1.0, %v452_v46  ;;  %vm456_vm4 = vcmp.lt.f32.partialorder %v455_v49, 0.0004427343 }
 0x285   : > { %v626_v44 = vpop.eup %625 }
 0x286   : > { %v458_v45 = vadd.f32 1.0, %v626_v44  ;;  %v461_v48 = vmul.f32 -0.5, %v626_v44  ;;  %v454_v53 = vmul.f32 %v624_v42, %v453_v47  ;;  %v464_v55 = vand.u32 2147483647, %v626_v44 }
 0x288   : > { %629 = vlog2.f32 %v458_v45  ;;  %v462_v54 = vadd.f32 1.0, %v461_v48  ;;  %vm465_vm5 = vcmp.lt.f32.partialorder %v464_v55, 0.0004427343 }
 0x28a   : > { %v463_v61 = vmul.f32 %v626_v44, %v462_v54 }
 0x291   : > { %v628_v51 = vpop.eup %627 }
 0x292   : > { %v451_v52 = vmul.f32 0.6931472, %v628_v51 }
 0x294   : > { %v457_v56 = vsel %vm456_vm4, %v454_v53, %v451_v52 }
 0x295   : > { %v630_v58 = vpop.eup %629  ;;  %v467_v62 = vadd.f32 %v457_v56, %v439_v59 }
 0x296   : > { %v460_v60 = vmul.f32 0.6931472, %v630_v58 }
 0x297   : > { %v472_v2 = vsel %vm471_vm6, %v467_v62, %v433_v31 }
 0x298   : > { %v466_v0 = vsel %vm465_vm5, %v463_v61, %v460_v60 }
 0x299   : > { %v468_v1 = vadd.f32 %v466_v0, %v440_v63 }
 0x29b   : > { %v473_v3 = vsel %vm471_vm6, %v468_v1, %v436_v36 }
 0x29c   : > { %v571_v4 = vpack.c.bf16 %v473_v3, %v472_v2 }
 0x29e   : > { %572 = vst [vmem:[%s226_s21] sm:$0xff] %v571_v4  }
 0x29f PF: > { %s15_s18 = sadd.s32 1, %s637_s18  }
 0x2a0   : > { %p12_p4 = scmp.ge.s32.totalorder %s15_s18, 4  }
 0x2a2   :  { %14 = sbr.rel (!%p12_p4) target bundleno = 1 (0x1), region = 70 }

</bundles_post_ra>
